<compile_context>
chip_gen: v5e
topology: v5e:2x2
jax: 0.10.0
libtpu: 0.0.40
codegen_flags: <defaults>
</compile_context>

<pallas_src>
import jax
import jax.numpy as jnp
from jax.experimental import pallas as pl
from jax.experimental.pallas import tpu as pltpu


def _patch_embed_kernel(patches_ref, w_ref, biaspos_ref, out_ref):
    # patches_ref: (Bt, N, K)  bf16 — flattened image patches for Bt images
    # w_ref:       (K, E)      bf16 — fused conv+linear weight
    # biaspos_ref: (N, E)      f32  — fused bias + position embeddings
    # out_ref:     (Bt, N, E)  bf16
    bt = patches_ref.shape[0]
    w = w_ref[...]                 # hoisted: loaded once per grid step
    bias = biaspos_ref[...]
    for i in range(bt):            # Bt is a small compile-time constant
        y = jnp.dot(patches_ref[i], w, preferred_element_type=jnp.float32)
        out_ref[i] = (y + bias).astype(out_ref.dtype)


def _choose_block_b(B, target=64):
    """Largest divisor of B that is <= target while leaving >= 2 grid steps."""
    if B <= 1:
        return 1
    for d in range(min(B // 2, target), 0, -1):
        if B % d == 0:
            return d
    return 1


def patch_embedding_forward(x, conv_w, conv_b, lin_w, lin_b, pos_emb,
                            patch_size, block_b=None, out_dtype=jnp.bfloat16):
    """x: (B, C_in, H, W) NCHW.  Returns (B, N, E) with N = (H/P)*(W/P)."""
    B, C_in, H, W = x.shape
    P = patch_size
    Hp, Wp = H // P, W // P
    N = Hp * Wp
    C_out = conv_w.shape[0]
    E = lin_w.shape[0]
    K = C_in * P * P

    pos = pos_emb.reshape(-1, E)
    assert pos.shape[0] == N, "position embedding table expects N patches"

    # --- fuse conv(=patch matmul) and Linear into one GEMM at trace time (exact) ---
    wc = conv_w.reshape(C_out, K).T.astype(jnp.float32)                    # (K, C_out)
    wl = lin_w.T.astype(jnp.float32)                                       # (C_out, E)
    w_fused = (wc @ wl).astype(jnp.bfloat16)                               # (K, E)
    b_fused = conv_b.astype(jnp.float32) @ wl + lin_b.astype(jnp.float32)  # (E,)
    bias_pos = pos.astype(jnp.float32) + b_fused[None, :]                  # (N, E) f32

    # --- patch extraction stays as XLA glue; cast to bf16 FIRST (half-width pass) ---
    xb = x.astype(jnp.bfloat16)
    patches = xb.reshape(B, C_in, Hp, P, Wp, P)
    patches = patches.transpose(0, 2, 4, 1, 3, 5)        # (B, Hp, Wp, C_in, P, P)
    patches = patches.reshape(B, N, K)                   # no padding

    if block_b is None:
        block_b = _choose_block_b(B)
    assert B % block_b == 0, "block_b must divide B (keeps the output slice-free)"
    n_blocks = B // block_b

    cost = pl.CostEstimate(
        flops=2 * B * N * K * E,
        transcendentals=0,
        bytes_accessed=int(B * N * K * 2 + K * E * 2 + N * E * 4
                           + B * N * E * jnp.dtype(out_dtype).itemsize),
    )

    out = pl.pallas_call(
        _patch_embed_kernel,
        out_shape=jax.ShapeDtypeStruct((B, N, E), out_dtype),
        grid_spec=pltpu.PrefetchScalarGridSpec(
            num_scalar_prefetch=0,
            grid=(n_blocks,),
            in_specs=[
                pl.BlockSpec((block_b, N, K), lambda b: (b, 0, 0)),  # patches
                pl.BlockSpec((K, E), lambda b: (0, 0)),              # fused weight
                pl.BlockSpec((N, E), lambda b: (0, 0)),              # bias + pos emb
            ],
            out_specs=pl.BlockSpec((block_b, N, E), lambda b: (b, 0, 0)),
        ),
        compiler_params=pltpu.CompilerParams(
            dimension_semantics=("parallel",)),
        cost_estimate=cost,
    )(patches, w_fused, bias_pos)

    return out


if __name__ == "__main__":
    # The module hard-codes 196 positions => spatial grid after the patch conv is 14x14.
    # Use patch_size=4 -> 56x56 images (small, consistent shapes).
    B, C_in, C_out, P, E = 2, 3, 8, 4, 32
    H = W = 14 * P
    N = (H // P) * (W // P)

    key = jax.random.PRNGKey(0)
    k_x, k_cw, k_cb, k_lw, k_lb, k_pos = jax.random.split(key, 6)

    x = jax.random.normal(k_x, (B, C_in, H, W), dtype=jnp.float32)
    conv_w = jax.random.normal(k_cw, (C_out, C_in, P, P), dtype=jnp.float32) * 0.05
    conv_b = jax.random.normal(k_cb, (C_out,), dtype=jnp.float32) * 0.05
    lin_w = jax.random.normal(k_lw, (E, C_out), dtype=jnp.float32) * 0.05
    lin_b = jax.random.normal(k_lb, (E,), dtype=jnp.float32) * 0.05
    pos_emb = jax.random.normal(k_pos, (1, 196, E), dtype=jnp.float32)

    fwd = jax.jit(patch_embedding_forward, static_argnums=(6,))
    out = jax.block_until_ready(fwd(x, conv_w, conv_b, lin_w, lin_b, pos_emb, P))

    # Pure-JAX f32 reference (conv via lax.conv_general_dilated, NCHW / OIHW).
    conv_ref = jax.lax.conv_general_dilated(
        x, conv_w, window_strides=(P, P), padding="VALID",
        dimension_numbers=("NCHW", "OIHW", "NCHW")) + conv_b[None, :, None, None]
    ref = conv_ref.reshape(B, C_out, N).transpose(0, 2, 1)   # flatten(2).permute(0,2,1)
    ref = ref @ lin_w.T + lin_b                              # Linear
    ref = pos_emb + ref                                      # + position embeddings

    assert out.shape == (B, N, E)
    assert out.dtype == jnp.bfloat16
    # bf16 MXU inputs + bf16 output => looser tolerance vs the pure-f32 reference.
    assert jnp.allclose(out.astype(jnp.float32), ref, atol=3e-2, rtol=3e-2), \
        "mismatch vs reference"
    print("KERNEL_OK")
</pallas_src>

<mosaic_0001>
module attributes {stable_mosaic.version = 11 : i64} {
  func.func @_patch_embed_kernel(%arg0: i32, %arg1: memref<1x196x48xbf16, #tpu.memory_space<vmem>>, %arg2: memref<48x32xbf16, #tpu.memory_space<vmem>>, %arg3: memref<196x32xf32, #tpu.memory_space<vmem>>, %arg4: memref<1x196x32xbf16, #tpu.memory_space<vmem>>) attributes {dimension_semantics = [#tpu.dimension_semantics<parallel>], iteration_bounds = array<i64: 2>, scalar_prefetch = 0 : i64, scratch_operands = 0 : i64, tpu.core_type = #tpu.core_type<tc>, window_params = [{transform_indices = @transform_0, window_bounds = array<i64: 1, 196, 48>}, {pipeline_mode = #tpu.pipeline_mode<synchronous>, transform_indices = @transform_1, window_bounds = array<i64: 48, 32>}, {pipeline_mode = #tpu.pipeline_mode<synchronous>, transform_indices = @transform_2, window_bounds = array<i64: 196, 32>}, {transform_indices = @transform_3, window_bounds = array<i64: 1, 196, 32>}]} {
    %c0 = arith.constant 0 : index
    %c0_0 = arith.constant 0 : index
    %0 = vector.load %arg2[%c0, %c0_0] : memref<48x32xbf16, #tpu.memory_space<vmem>>, vector<48x32xbf16>
    %c0_1 = arith.constant 0 : index
    %c0_2 = arith.constant 0 : index
    %1 = vector.load %arg3[%c0_1, %c0_2] : memref<196x32xf32, #tpu.memory_space<vmem>>, vector<196x32xf32>
    %c0_3 = arith.constant 0 : index
    %c0_4 = arith.constant 0 : index
    %c0_5 = arith.constant 0 : index
    %2 = vector.load %arg1[%c0_3, %c0_4, %c0_5] : memref<1x196x48xbf16, #tpu.memory_space<vmem>>, vector<1x196x48xbf16>
    %3 = vector.shape_cast %2 : vector<1x196x48xbf16> to vector<196x48xbf16>
    %cst = arith.constant dense<0.000000e+00> : vector<196x32xf32>
    %4 = tpu.matmul %3, %0, %cst {dimension_numbers = #tpu.dot_dimension_numbers<[1], [0], [0], [1], [0, 0, 1, 1], [], []>} : vector<196x48xbf16>, vector<48x32xbf16>, vector<196x32xf32> -> vector<196x32xf32>
    %5 = arith.addf %4, %1 : vector<196x32xf32>
    %6 = arith.truncf %5 : vector<196x32xf32> to vector<196x32xbf16>
    %c0_6 = arith.constant 0 : index
    %c0_7 = arith.constant 0 : index
    %c0_8 = arith.constant 0 : index
    %7 = vector.load %arg4[%c0_6, %c0_7, %c0_8] : memref<1x196x32xbf16, #tpu.memory_space<vmem>>, vector<1x196x32xbf16>
    %8 = vector.shape_cast %7 : vector<1x196x32xbf16> to vector<196x32xbf16>
    %9 = vector.shape_cast %6 : vector<196x32xbf16> to vector<1x196x32xbf16>
    tpu.vector_store %arg4[%c0_6, %c0_7, %c0_8], %9 {strides = array<i32>} : memref<1x196x32xbf16, #tpu.memory_space<vmem>>, vector<1x196x32xbf16>,
    return
  }
  func.func @transform_0(%arg0: i32) -> (i32, i32, i32) {
    %c0_i32 = arith.constant 0 : i32
    %c0_i32_0 = arith.constant 0 : i32
    %c0_i32_1 = arith.constant 0 : i32
    return %arg0, %c0_i32, %c0_i32_0 : i32, i32, i32
  }
  func.func @transform_1(%arg0: i32) -> (i32, i32) {
    %c0_i32 = arith.constant 0 : i32
    %c0_i32_0 = arith.constant 0 : i32
    %c0_i32_1 = arith.constant 0 : i32
    return %c0_i32, %c0_i32_0 : i32, i32
  }
  func.func @transform_2(%arg0: i32) -> (i32, i32) {
    %c0_i32 = arith.constant 0 : i32
    %c0_i32_0 = arith.constant 0 : i32
    %c0_i32_1 = arith.constant 0 : i32
    return %c0_i32, %c0_i32_0 : i32, i32
  }
  func.func @transform_3(%arg0: i32) -> (i32, i32, i32) {
    %c0_i32 = arith.constant 0 : i32
    %c0_i32_0 = arith.constant 0 : i32
    %c0_i32_1 = arith.constant 0 : i32
    return %arg0, %c0_i32, %c0_i32_0 : i32, i32, i32
  }
}

</mosaic_0001>

<bundles_post_ra>
// kernel: patch_embedding_forward.1
= control target key start
LH: loop header
LB: loop body
LE: loop exit
PB: predicated region body
PF: predicated region fallthrough
CT: control target
= control target key end

     0   :  { %s672_s12 = smov 0   ;;  %s859_s0 = inlined_call_operand.vmem [shape: bf16[2,196,48], index: 0, kind: input, shape index: {}]   ;;  %s860_s1 = inlined_call_operand.vmem [shape: bf16[48,32], index: 1, kind: input, shape index: {}]   ;;  %s861_s2 = inlined_call_operand.vmem [shape: f32[196,32], index: 2, kind: input, shape index: {}]   ;;  %s862_s3 = inlined_call_operand.vmem [shape: bf16[2,196,32], index: 3, kind: output, shape index: {}]  }
   0x1 LB: > { %s529_s13 = sadd.s32 4294967295, %s650_s12   ;;  %p533_p0 = scmp.ge.s32.totalorder %s650_s12, 1  ;;  %s650_s12 = sphi %s672_s12, %s13_s12  }
   0x2   : > { %p137_p1 = scmp.lt.s32.totalorder %s650_s12, 3 }
   0x4   : > { %p138_p2 = pnand %p533_p0, %p137_p1 }
   0x5   : > { %p161_p3 = scmp.lt.s32.totalorder (!%p138_p2), %s529_s13, 1 }
   0x6   : > { %141 = sbr.rel (%p138_p2) target bundleno = 216 (0xd8), region = 32 }
   0xb   : > { %v613_v0 = vld [vmem:[%s860_s1 + $0x10] sm:$0xff]  ;;  %v612_v1 = vld [vmem:[%s860_s1 + $0x8] sm:$0xff]  ;;  %s864_s13 = smov (!%p161_p3, %s529_s13), 1  ;;  %v611_v2 = vld [vmem:[%s860_s1] sm:$0xff]  ;;  %vm309_vm0 = vcmask 392192   ;;  %vm447_vm1 = vcmask 257024  }
   0xc   : > { %626 = vmatpush.bf16.msra.mxu1 %v613_v0  ;;  %627 = vmatpush.bf16.msra.mxu2 %v613_v0  ;;  %s635_s18 = smul.u32 100, %s864_s13  ;;  %v184_v18 = vld [vmem:[%s861_s2 + $0x30] sm:$0xff]  ;;  %v178_v19 = vld [vmem:[%s861_s2] sm:$0xff]  ;;  %v185_v29 = vld [vmem:[%s861_s2 + $0x38] sm:$0xff]  ;;  %vm472_vm2 = vcmask 254976  }
   0xd   : > { %354 = vmatpush.bf16.msra.mxu0 %v613_v0  ;;  %628 = vmatpush.bf16.msra.mxu3 %v613_v0  ;;  %v192_v25 = vld [vmem:[%s861_s2 + $0x70] sm:$0xff]  ;;  %v179_v31 = vld [vmem:[%s861_s2 + $0x8] sm:$0xff]  ;;  %v193_v41 = vld [vmem:[%s861_s2 + $0x78] sm:$0xff] }
   0xe   : > { %s697_s23 = scalar_lea.vmem %s859_s0, %s635_s18  ;;  %s736_s30 = scalar_lea.vmem %s862_s3, %s635_s18  ;;  %v200_v27 = vld [vmem:[%s861_s2 + $0xb0] sm:$0xff]  ;;  %v201_v43 = vld [vmem:[%s861_s2 + $0xb8] sm:$0xff]  ;;  %v186_v45 = vld [vmem:[%s861_s2 + $0x40] sm:$0xff] }
   0xf   : > { %v617_v3 = vld [vmem:[%s697_s23 + $0x18] sm:$0xff]  ;;  %v614_v5 = vld [vmem:[%s697_s23] sm:$0xff]  ;;  %v615_v11 = vld [vmem:[%s697_s23 + $0x8] sm:$0xff] }
  0x10   : > { %629 = vmatpush.bf16.msra.mxu1 %v612_v1  ;;  %630 = vmatpush.bf16.msra.mxu2 %v612_v1  ;;  %v621_v4 = vld [vmem:[%s697_s23 + $0x38] sm:$0xff]  ;;  %v227_v7 = vld [vmem:[%s697_s23 + $0x60] sm:$0x3]  ;;  %v619_v13 = vld [vmem:[%s697_s23 + $0x28] sm:$0xff] }
  0x11   : > { %355 = vmatpush.bf16.msra.mxu0 %v612_v1  ;;  %631 = vmatpush.bf16.msra.mxu3 %v612_v1  ;;  %v625_v6 = vld [vmem:[%s697_s23 + $0x58] sm:$0xff]  ;;  %v277_v8 = vunpack.c.l.b16 %v227_v7  ;;  %v618_v9 = vld [vmem:[%s697_s23 + $0x20] sm:$0xff]  ;;  %v623_v14 = vld [vmem:[%s697_s23 + $0x48] sm:$0xff] }
  0x12   : > { %v622_v10 = vld [vmem:[%s697_s23 + $0x40] sm:$0xff]  ;;  %v616_v15 = vld [vmem:[%s697_s23 + $0x10] sm:$0xff]  ;;  %v187_v61 = vld [vmem:[%s861_s2 + $0x48] sm:$0xff] }
  0x13   : > { %v290_v12 = vpack.c.b16 %v277_v8, %v277_v8  ;;  %v620_v16 = vld [vmem:[%s697_s23 + $0x30] sm:$0xff]  ;;  %v194_v57 = vld [vmem:[%s861_s2 + $0x80] sm:$0xff]  ;;  %v181_v63 = vld [vmem:[%s861_s2 + $0x18] sm:$0xff] }
  0x14   : > { %632 = vmatpush.bf16.msra.mxu1 %v611_v2  ;;  %633 = vmatpush.bf16.msra.mxu2 %v611_v2  ;;  %v624_v17 = vld [vmem:[%s697_s23 + $0x50] sm:$0xff]  ;;  %v202_v59 = vld [vmem:[%s861_s2 + $0xc0] sm:$0xf] }
  0x15   : > { %356 = vmatpush.bf16.msra.mxu0 %v611_v2  ;;  %634 = vmatpush.bf16.msra.mxu3 %v611_v2  ;;  %v180_v47 = vld [vmem:[%s861_s2 + $0x10] sm:$0xff] }
  0x17   : > { %599 = vmatmul.msk.bf16.vlgmr.msra.gmra.mxu1 %vm309_vm0, %v617_v3  ;;  %603 = vmatmul.msk.bf16.vlgmr.msra.gmra.mxu2 %vm309_vm0, %v621_v4 }
  0x18   : > { %596 = vmatmul.msk.bf16.vlgmr.msra.gmra.mxu0 %vm309_vm0, %v614_v5  ;;  %607 = vmatmul.msk.bf16.vlgmr.msra.gmra.mxu3 %vm309_vm0, %v625_v6 }
  0x27   : > { %600 = vmatmul.msk.bf16.gmra.mxu1 %vm309_vm0, %v618_v9  ;;  %604 = vmatmul.msk.bf16.gmra.mxu2 %vm309_vm0, %v622_v10  ;;  %v195_v9 = vld [vmem:[%s861_s2 + $0x88] sm:$0xff] }
  0x28   : > { %597 = vmatmul.msk.bf16.gmra.mxu0 %vm309_vm0, %v615_v11  ;;  %608 = vmatmul.msk.bf16.gmra.mxu3 %vm309_vm0, %v290_v12  ;;  %v188_v12 = vld [vmem:[%s861_s2 + $0x50] sm:$0xff] }
  0x37   : > { %601 = vmatmul.msk.bf16.gmra.mxu1 %vm309_vm0, %v619_v13  ;;  %605 = vmatmul.msk.bf16.gmra.mxu2 %vm309_vm0, %v623_v14  ;;  %v182_v14 = vld [vmem:[%s861_s2 + $0x20] sm:$0xff] }
  0x38   : > { %598 = vmatmul.msk.bf16.gmra.mxu0 %vm309_vm0, %v616_v15 }
  0x47   : > { %602 = vmatmul.msk.bf16.gmra.mxu1 %vm309_vm0, %v620_v16  ;;  %606 = vmatmul.msk.bf16.gmra.mxu2 %vm309_vm0, %v624_v17 }
  0x94   : > { %v373_v20 = vpop.f32.mrf.mxu1 }
  0x95   : > { %v374_v21 = vadd.f32 %v373_v20, %v184_v18  ;;  %v358_v22 = vpop.f32.mrf.mxu0 }
  0x96   : > { %v359_v23 = vadd.f32 %v358_v22, %v178_v19  ;;  %v196_v22 = vld [vmem:[%s861_s2 + $0x90] sm:$0xff] }
  0x97   : > { %v428_v24 = vpack.c.bf16 %v374_v21, %v374_v21 }
  0x98   : > { %v422_v26 = vpack.c.bf16 %v359_v23, %v359_v23 }
  0x99   : > { %454 = vst.msk [vmem:[%s736_s30 + $0x18] sm:$0xf] %vm447_vm1, %v428_v24 }
  0x9a   : > { %v393_v28 = vpop.f32.mrf.mxu2  ;;  %448 = vst.msk [vmem:[%s736_s30] sm:$0xf] %vm447_vm1, %v422_v26 }
  0x9b   : > { %v394_v30 = vadd.f32 %v393_v28, %v192_v25  ;;  %v413_v32 = vpop.f32.mrf.mxu3  ;;  %v189_v25 = vld [vmem:[%s861_s2 + $0x58] sm:$0xff] }
  0x9c   : > { %v375_v33 = vpop.f32.mrf.mxu1  ;;  %v414_v34 = vadd.f32 %v413_v32, %v200_v27  ;;  %v183_v27 = vld [vmem:[%s861_s2 + $0x28] sm:$0xff] }
  0x9d   : > { %v436_v35 = vpack.c.bf16 %v394_v30, %v394_v30  ;;  %v376_v36 = vadd.f32 %v375_v33, %v185_v29  ;;  %v360_v37 = vpop.f32.mrf.mxu0 }
  0x9e   : > { %v361_v38 = vadd.f32 %v360_v37, %v179_v31  ;;  %v444_v39 = vpack.c.bf16 %v414_v34, %v414_v34  ;;  %v197_v34 = vld [vmem:[%s861_s2 + $0x98] sm:$0xff]  ;;  %v190_v37 = vld [vmem:[%s861_s2 + $0x60] sm:$0xff] }
  0x9f   : > { %462 = vst.msk [vmem:[%s736_s30 + $0x38] sm:$0xf] %vm447_vm1, %v436_v35  ;;  %v429_v40 = vpack.c.bf16 %v376_v36, %v376_v36 }
  0xa0   : > { %v423_v42 = vpack.c.bf16 %v361_v38, %v361_v38  ;;  %470 = vst.msk [vmem:[%s736_s30 + $0x58] sm:$0xf] %vm447_vm1, %v444_v39 }
  0xa1   : > { %455 = vst.msk [vmem:[%s736_s30 + $0x1c] sm:$0xf] %vm447_vm1, %v429_v40 }
  0xa2   : > { %v395_v44 = vpop.f32.mrf.mxu2  ;;  %449 = vst.msk [vmem:[%s736_s30 + $0x4] sm:$0xf] %vm447_vm1, %v423_v42 }
  0xa3   : > { %v396_v46 = vadd.f32 %v395_v44, %v193_v41  ;;  %v415_v48 = vpop.f32.mrf.mxu3 }
  0xa4   : > { %v378_v49 = vpop.f32.mrf.mxu1  ;;  %v416_v50 = vadd.f32 %v415_v48, %v201_v43  ;;  %v198_v43 = vld [vmem:[%s861_s2 + $0xa0] sm:$0xff] }
  0xa5   : > { %v437_v51 = vpack.c.bf16 %v396_v46, %v396_v46  ;;  %v379_v52 = vadd.f32 %v378_v49, %v186_v45  ;;  %v363_v53 = vpop.f32.mrf.mxu0  ;;  %v191_v45 = vld [vmem:[%s861_s2 + $0x68] sm:$0xff] }
  0xa6   : > { %v364_v54 = vadd.f32 %v363_v53, %v180_v47  ;;  %v445_v55 = vpack.c.bf16 %v416_v50, %v416_v50 }
  0xa7   : > { %463 = vst.msk [vmem:[%s736_s30 + $0x3c] sm:$0xf] %vm447_vm1, %v437_v51  ;;  %v430_v56 = vpack.c.bf16 %v379_v52, %v379_v52  ;;  %v199_v51 = vld [vmem:[%s861_s2 + $0xa8] sm:$0xff] }
  0xa8   : > { %v424_v58 = vpack.c.bf16 %v364_v54, %v364_v54  ;;  %471 = vst.msk [vmem:[%s736_s30 + $0x5c] sm:$0xf] %vm447_vm1, %v445_v55 }
  0xa9   : > { %456 = vst.msk [vmem:[%s736_s30 + $0x20] sm:$0xf] %vm447_vm1, %v430_v56 }
  0xaa   : > { %v398_v60 = vpop.f32.mrf.mxu2  ;;  %450 = vst.msk [vmem:[%s736_s30 + $0x8] sm:$0xf] %vm447_vm1, %v424_v58 }
  0xab   : > { %v399_v62 = vadd.f32 %v398_v60, %v194_v57  ;;  %v418_v0 = vpop.f32.mrf.mxu3 }
  0xac   : > { %v380_v1 = vpop.f32.mrf.mxu1  ;;  %v419_v2 = vadd.f32 %v418_v0, %v202_v59 }
  0xad   : > { %v438_v3 = vpack.c.bf16 %v399_v62, %v399_v62  ;;  %v381_v4 = vadd.f32 %v380_v1, %v187_v61  ;;  %v365_v5 = vpop.f32.mrf.mxu0 }
  0xae   : > { %v366_v6 = vadd.f32 %v365_v5, %v181_v63  ;;  %v446_v7 = vpack.c.bf16 %v419_v2, %v419_v2 }
  0xaf   : > { %464 = vst.msk [vmem:[%s736_s30 + $0x40] sm:$0xf] %vm447_vm1, %v438_v3  ;;  %v431_v8 = vpack.c.bf16 %v381_v4, %v381_v4 }
  0xb0   : > { %v425_v10 = vpack.c.bf16 %v366_v6, %v366_v6  ;;  %473 = vst.msk [vmem:[%s736_s30 + $0x60] sm:$0x3] %vm472_vm2, %v446_v7 }
  0xb1   : > { %457 = vst.msk [vmem:[%s736_s30 + $0x24] sm:$0xf] %vm447_vm1, %v431_v8 }
  0xb2   : > { %v400_v11 = vpop.f32.mrf.mxu2  ;;  %451 = vst.msk [vmem:[%s736_s30 + $0xc] sm:$0xf] %vm447_vm1, %v425_v10 }
  0xb3   : > { %v401_v13 = vadd.f32 %v400_v11, %v195_v9  ;;  %v420_v15 = vpop.f32.mrf.mxu3 }
  0xb4   : > { %v383_v16 = vpop.f32.mrf.mxu1 }
  0xb5   : > { %v439_v17 = vpack.c.bf16 %v401_v13, %v401_v13  ;;  %v384_v18 = vadd.f32 %v383_v16, %v188_v12  ;;  %v368_v19 = vpop.f32.mrf.mxu0 }
  0xb6   : > { %v369_v20 = vadd.f32 %v368_v19, %v182_v14 }
  0xb7   : > { %465 = vst.msk [vmem:[%s736_s30 + $0x44] sm:$0xf] %vm447_vm1, %v439_v17  ;;  %v432_v21 = vpack.c.bf16 %v384_v18, %v384_v18 }
  0xb8   : > { %v426_v23 = vpack.c.bf16 %v369_v20, %v369_v20 }
  0xb9   : > { %458 = vst.msk [vmem:[%s736_s30 + $0x28] sm:$0xf] %vm447_vm1, %v432_v21 }
  0xba   : > { %v403_v24 = vpop.f32.mrf.mxu2  ;;  %452 = vst.msk [vmem:[%s736_s30 + $0x10] sm:$0xf] %vm447_vm1, %v426_v23 }
  0xbb   : > { %v404_v26 = vadd.f32 %v403_v24, %v196_v22 }
  0xbc   : > { %v385_v28 = vpop.f32.mrf.mxu1 }
  0xbd   : > { %v440_v29 = vpack.c.bf16 %v404_v26, %v404_v26  ;;  %v386_v30 = vadd.f32 %v385_v28, %v189_v25  ;;  %v370_v31 = vpop.f32.mrf.mxu0 }
  0xbe   : > { %v371_v32 = vadd.f32 %v370_v31, %v183_v27 }
  0xbf   : > { %466 = vst.msk [vmem:[%s736_s30 + $0x48] sm:$0xf] %vm447_vm1, %v440_v29  ;;  %v433_v33 = vpack.c.bf16 %v386_v30, %v386_v30 }
  0xc0   : > { %v427_v35 = vpack.c.bf16 %v371_v32, %v371_v32 }
  0xc1   : > { %459 = vst.msk [vmem:[%s736_s30 + $0x2c] sm:$0xf] %vm447_vm1, %v433_v33 }
  0xc2   : > { %v405_v36 = vpop.f32.mrf.mxu2  ;;  %453 = vst.msk [vmem:[%s736_s30 + $0x14] sm:$0xf] %vm447_vm1, %v427_v35 }
  0xc3   : > { %v406_v38 = vadd.f32 %v405_v36, %v197_v34 }
  0xc4   : > { %v388_v39 = vpop.f32.mrf.mxu1 }
  0xc5   : > { %v441_v40 = vpack.c.bf16 %v406_v38, %v406_v38  ;;  %v389_v41 = vadd.f32 %v388_v39, %v190_v37 }
  0xc7   : > { %467 = vst.msk [vmem:[%s736_s30 + $0x4c] sm:$0xf] %vm447_vm1, %v441_v40  ;;  %v434_v42 = vpack.c.bf16 %v389_v41, %v389_v41 }
  0xc9   : > { %460 = vst.msk [vmem:[%s736_s30 + $0x30] sm:$0xf] %vm447_vm1, %v434_v42 }
  0xca   : > { %v408_v44 = vpop.f32.mrf.mxu2 }
  0xcb   : > { %v409_v46 = vadd.f32 %v408_v44, %v198_v43 }
  0xcc   : > { %v390_v47 = vpop.f32.mrf.mxu1 }
  0xcd   : > { %v442_v48 = vpack.c.bf16 %v409_v46, %v409_v46  ;;  %v391_v49 = vadd.f32 %v390_v47, %v191_v45 }
  0xcf   : > { %468 = vst.msk [vmem:[%s736_s30 + $0x50] sm:$0xf] %vm447_vm1, %v442_v48  ;;  %v435_v50 = vpack.c.bf16 %v391_v49, %v391_v49 }
  0xd1   : > { %461 = vst.msk [vmem:[%s736_s30 + $0x34] sm:$0xf] %vm447_vm1, %v435_v50 }
  0xd2   : > { %v410_v52 = vpop.f32.mrf.mxu2 }
  0xd3   : > { %v411_v53 = vadd.f32 %v410_v52, %v199_v51 }
  0xd5   : > { %v443_v54 = vpack.c.bf16 %v411_v53, %v411_v53 }
  0xd7   : > { %469 = vst.msk [vmem:[%s736_s30 + $0x54] sm:$0xf] %vm447_vm1, %v443_v54 }
  0xd8 PF: > { %s13_s12 = sadd.s32 1, %s650_s12  }
  0xd9   : > { %p10_p4 = scmp.ge.s32.totalorder %s13_s12, 4  }
  0xdb   :  { %12 = sbr.rel (!%p10_p4) target bundleno = 1 (0x1), region = 62 }

</bundles_post_ra>
